<compile_context>
chip_gen: v5e
topology: v5e:2x2
jax: 0.10.0
libtpu: 0.0.40
codegen_flags: <defaults>
</compile_context>

<pallas_src>
import math

import jax
import jax.numpy as jnp
from jax.experimental import pallas as pl
from jax.experimental.pallas import tpu as pltpu


def speaker_attn_kernel(x_ref, bias_ref, A_ref,
                        wqkv_ref, bqkv_ref, wo_ref, bo_ref, o_ref):
    # Per grid step (one batch element):
    #   x_ref    : (1, S, D)     f32
    #   bias_ref : (1, 2, S, S)  bf16  additive mask bias (0 / -1e30), [same, other]
    #   A_ref    : (1, H, S, S)  bf16  attention_weights multiplier
    #   wqkv_ref : (D, 6*H*dk)   bf16  packed q/k/v weights (both branches), scale folded into q
    #   bqkv_ref : (1, 6*H*dk)   f32   packed q/k/v biases
    #   wo_ref   : (2*H*dk, D)   bf16  packed output projection (branch+head rows)
    #   bo_ref   : (1, D)        f32   pre-summed output biases of both branches
    #   o_ref    : (1, S, D)     f32
    S, D = x_ref.shape[1], x_ref.shape[2]
    H = A_ref.shape[1]
    dk = D // H
    G = 2 * H            # fused (branch, head) batch: [same heads..., other heads...]
    gsz = 3 * dk          # packed width per group: [q | k | v]

    x = x_ref[0].astype(jnp.bfloat16)                                    # (S, D)

    # ---- item 1: ONE lane-dense 2-D matmul projects q/k/v of both branches -------
    proj = jnp.dot(x, wqkv_ref[...], preferred_element_type=jnp.float32)  # (S, 6*H*dk)
    proj = (proj + bqkv_ref[...]).astype(jnp.bfloat16)

    # per-(branch,head) operands via static slices + leading-dim stack (cheap views,
    # no broadcast of x, no per-head projection matmuls).
    qkv = jnp.stack([proj[:, g * gsz:(g + 1) * gsz] for g in range(G)], axis=0)  # (G, S, 3*dk)
    q = qkv[:, :, 0 * dk:1 * dk]                                         # (G, S, dk)
    k = qkv[:, :, 1 * dk:2 * dk]
    v = qkv[:, :, 2 * dk:3 * dk]

    # ---- item 2: one scores / softmax / PV pass over both branches' heads --------
    s = jnp.einsum('gqd,gkd->gqk', q, k,
                   preferred_element_type=jnp.float32)                   # (G, S, S) f32

    A = A_ref[0].astype(jnp.float32)                                     # (H, S, S)
    bias = bias_ref[0].astype(jnp.float32)                               # (2, S, S)
    # torch order: logits * A, then mask; leading-dim split/merge reshapes are free.
    att = (s.reshape(2, H, S, S) * A[None] + bias[:, None]).reshape(G, S, S)

    m = jnp.max(att, axis=-1, keepdims=True)
    e = jnp.exp(att - m)
    r = pl.reciprocal(jnp.sum(e, axis=-1, keepdims=True), approx=False)  # exact: tighter parity
    p = (e * r).astype(jnp.bfloat16)                                     # dropout == identity (eval)

    ctx = jnp.einsum('gqk,gkd->gqd', p, v,
                     preferred_element_type=jnp.float32)                 # (G, S, dk)

    # ---- item 3: branch+head merge + output projection as ONE 2-D matmul ---------
    # concat(branch, head) along lanes -> (S, 2*H*dk); the MXU contraction with the
    # packed Wo then performs the head-sum AND the same+other branch sum for free.
    ctx2d = jnp.concatenate([ctx[g] for g in range(G)], axis=-1).astype(jnp.bfloat16)
    out = jnp.dot(ctx2d, wo_ref[...], preferred_element_type=jnp.float32)  # (S, D)
    o_ref[0] = (out + bo_ref[...]).astype(o_ref.dtype)


def _pack_params(params, H, dk, scale):
    """Host-side repack of torch-style linear weights into lane-dense bf16 MXU operands.

    - q/k/v weights of BOTH branches -> one (D, 2*H*3*dk) matrix; columns grouped
      per (branch, head) as [q | k | v]; 1/sqrt(dk) folded into the q columns.
    - Output projections stacked row-wise into (2*H*dk, D) so branch+head sums
      happen inside a single MXU contraction; output biases pre-summed.
    """
    def per_branch(wqkv, bqkv):
        D = wqkv.shape[1]
        w = wqkv.reshape(3, D, H, dk)                        # (3, D, H, dk)
        b = bqkv.reshape(3, H, dk)                           # (3, H, dk)
        sc = jnp.asarray([scale, 1.0, 1.0], jnp.float32)     # fold 1/sqrt(dk) into q only
        w = w * sc[:, None, None, None]
        b = b * sc[:, None, None]
        w = jnp.transpose(w, (1, 2, 0, 3)).reshape(D, H * 3 * dk)   # columns: head-major, [q|k|v]
        b = jnp.transpose(b, (1, 0, 2)).reshape(1, H * 3 * dk)
        return w, b

    w_s, b_s = per_branch(params["wqkv_same"], params["bqkv_same"])
    w_o, b_o = per_branch(params["wqkv_other"], params["bqkv_other"])
    w_pack = jnp.concatenate([w_s, w_o], axis=1).astype(jnp.bfloat16)    # (D, 6*H*dk)
    b_pack = jnp.concatenate([b_s, b_o], axis=1).astype(jnp.float32)     # (1, 6*H*dk)

    wo_pack = jnp.concatenate([params["wo_same"], params["wo_other"]],
                              axis=0).astype(jnp.bfloat16)               # (2*H*dk, D)
    bo_sum = (params["bo_same"] + params["bo_other"]).astype(jnp.float32)  # (1, D)
    return w_pack, b_pack, wo_pack, bo_sum


def speaker_aware_attention(x, same_mask, other_mask, A, params):
    B, S, D = x.shape
    H = A.shape[1]
    dk = D // H
    scale = 1.0 / math.sqrt(dk)

    w_pack, b_pack, wo_pack, bo_sum = _pack_params(params, H, dk, scale)

    # item 4: mask -> additive bias and the A downcast happen once in the wrapper
    # (halves the dominant per-batch DMA bytes, removes the per-step VPU select).
    # -1e30 instead of -inf so a fully-masked row gives a uniform softmax, not NaN.
    neg = jnp.float32(-1e30)
    bias = jnp.stack(
        [jnp.where(same_mask[:, 0] > 0.0, neg, jnp.float32(0.0)),
         jnp.where(other_mask[:, 0] > 0.0, neg, jnp.float32(0.0))],
        axis=1).astype(jnp.bfloat16)                                     # (B, 2, S, S)
    A_bf = A.astype(jnp.bfloat16)

    in_specs = [
        pl.BlockSpec((1, S, D), lambda b: (b, 0, 0)),
        pl.BlockSpec((1, 2, S, S), lambda b: (b, 0, 0, 0)),
        pl.BlockSpec((1, H, S, S), lambda b: (b, 0, 0, 0)),
        # weights: constant block index -> DMA'd once, stay VMEM-resident
        pl.BlockSpec(w_pack.shape, lambda b: (0, 0)),
        pl.BlockSpec(b_pack.shape, lambda b: (0, 0)),
        pl.BlockSpec(wo_pack.shape, lambda b: (0, 0)),
        pl.BlockSpec(bo_sum.shape, lambda b: (0, 0)),
    ]

    return pl.pallas_call(
        speaker_attn_kernel,
        out_shape=jax.ShapeDtypeStruct((B, S, D), x.dtype),
        grid_spec=pltpu.PrefetchScalarGridSpec(
            num_scalar_prefetch=0,
            grid=(B,),
            in_specs=in_specs,
            out_specs=pl.BlockSpec((1, S, D), lambda b: (b, 0, 0)),
        ),
        compiler_params=pltpu.CompilerParams(
            dimension_semantics=("parallel",),
        ),
    )(x, bias, A_bf, w_pack, b_pack, wo_pack, bo_sum)


# ----------------------------- pure-JAX reference -----------------------------
def _sdpa_ref(x, mask, A, wqkv, bqkv, wo, bo, H, dk):
    B, S, D = x.shape
    q = (x @ wqkv[0] + bqkv[0]).reshape(B, S, H, dk).transpose(0, 2, 1, 3)
    k = (x @ wqkv[1] + bqkv[1]).reshape(B, S, H, dk).transpose(0, 2, 1, 3)
    v = (x @ wqkv[2] + bqkv[2]).reshape(B, S, H, dk).transpose(0, 2, 1, 3)
    att = jnp.einsum('bhqd,bhkd->bhqk', q, k) / math.sqrt(dk)
    att = att * A
    att = jnp.where(mask > 0.0, -jnp.inf, att)
    att = jax.nn.softmax(att, axis=-1)
    out = jnp.einsum('bhqk,bhkd->bhqd', att, v)
    out = out.transpose(0, 2, 1, 3).reshape(B, S, H * dk)
    return out @ wo + bo


def speaker_aware_attention_ref(x, same_mask, other_mask, A, p, H, dk):
    return (_sdpa_ref(x, same_mask, A, p["wqkv_same"], p["bqkv_same"],
                      p["wo_same"], p["bo_same"], H, dk)
            + _sdpa_ref(x, other_mask, A, p["wqkv_other"], p["bqkv_other"],
                        p["wo_other"], p["bo_other"], H, dk))


# ----------------------------------- main -----------------------------------
if __name__ == "__main__":
    B, S, D, H = 2, 8, 32, 4
    dk = D // H

    key = jax.random.PRNGKey(0)
    keys = jax.random.split(key, 12)

    # Deterministic parameter init (synthetic weights, not a checkpoint).
    def make_params(k0, k1, k2, k3):
        return {
            "wqkv": 0.1 * jax.random.normal(k0, (3, D, H * dk), jnp.float32),
            "bqkv": 0.1 * jax.random.normal(k1, (3, 1, H * dk), jnp.float32),
            "wo": 0.1 * jax.random.normal(k2, (H * dk, D), jnp.float32),
            "bo": 0.1 * jax.random.normal(k3, (1, D), jnp.float32),
        }

    p_same = make_params(*keys[0:4])
    p_other = make_params(*keys[4:8])
    params = {
        "wqkv_same": p_same["wqkv"], "bqkv_same": p_same["bqkv"],
        "wo_same": p_same["wo"], "bo_same": p_same["bo"],
        "wqkv_other": p_other["wqkv"], "bqkv_other": p_other["bqkv"],
        "wo_other": p_other["wo"], "bo_other": p_other["bo"],
    }

    x = jax.random.normal(keys[8], (B, S, D), jnp.float32)

    # Speaker pattern: alternating speakers 0/1 -> every row of each mask keeps
    # at least one unmasked key (so softmax never sees an all-masked row).
    speakers = jnp.array([0, 1, 0, 1, 0, 1, 0, 1], dtype=jnp.int32)
    diff = (speakers[:, None] != speakers[None, :])
    same_mask = jnp.broadcast_to(diff.astype(jnp.float32), (B, 1, S, S))      # mask different-speaker keys
    other_mask = jnp.broadcast_to((~diff).astype(jnp.float32), (B, 1, S, S))  # mask same-speaker keys

    A = jax.random.uniform(keys[9], (B, H, S, S), jnp.float32, 0.5, 1.5)

    out = speaker_aware_attention(x, same_mask, other_mask, A, params)
    out = jax.block_until_ready(out)

    ref = speaker_aware_attention_ref(x, same_mask, other_mask, A, params, H, dk)
    assert out.shape == (B, S, D)
    # bf16 MXU matmuls + bf16 A/mask-bias -> loosened tolerance vs f32 reference.
    assert bool(jnp.allclose(out, ref, atol=3e-2, rtol=3e-2)), "mismatch vs reference"

    print("KERNEL_OK")
</pallas_src>

<mosaic_0001>
module attributes {stable_mosaic.version = 11 : i64} {
  func.func @speaker_attn_kernel(%arg0: i32, %arg1: memref<1x8x32xf32, #tpu.memory_space<vmem>>, %arg2: memref<1x2x8x8xbf16, #tpu.memory_space<vmem>>, %arg3: memref<1x4x8x8xbf16, #tpu.memory_space<vmem>>, %arg4: memref<32x192xbf16, #tpu.memory_space<vmem>>, %arg5: memref<1x192xf32, #tpu.memory_space<vmem>>, %arg6: memref<64x32xbf16, #tpu.memory_space<vmem>>, %arg7: memref<1x32xf32, #tpu.memory_space<vmem>>, %arg8: memref<1x8x32xf32, #tpu.memory_space<vmem>>) attributes {dimension_semantics = [#tpu.dimension_semantics<parallel>], iteration_bounds = array<i64: 2>, scalar_prefetch = 0 : i64, scratch_operands = 0 : i64, tpu.core_type = #tpu.core_type<tc>, window_params = [{transform_indices = @transform_0, window_bounds = array<i64: 1, 8, 32>}, {transform_indices = @transform_1, window_bounds = array<i64: 1, 2, 8, 8>}, {transform_indices = @transform_2, window_bounds = array<i64: 1, 4, 8, 8>}, {pipeline_mode = #tpu.pipeline_mode<synchronous>, transform_indices = @transform_3, window_bounds = array<i64: 32, 192>}, {pipeline_mode = #tpu.pipeline_mode<synchronous>, transform_indices = @transform_4, window_bounds = array<i64: 1, 192>}, {pipeline_mode = #tpu.pipeline_mode<synchronous>, transform_indices = @transform_5, window_bounds = array<i64: 64, 32>}, {pipeline_mode = #tpu.pipeline_mode<synchronous>, transform_indices = @transform_6, window_bounds = array<i64: 1, 32>}, {transform_indices = @transform_7, window_bounds = array<i64: 1, 8, 32>}]} {
    %c0 = arith.constant 0 : index
    %c0_0 = arith.constant 0 : index
    %c0_1 = arith.constant 0 : index
    %0 = vector.load %arg1[%c0, %c0_0, %c0_1] : memref<1x8x32xf32, #tpu.memory_space<vmem>>, vector<1x8x32xf32>
    %1 = vector.shape_cast %0 : vector<1x8x32xf32> to vector<8x32xf32>
    %2 = arith.truncf %1 : vector<8x32xf32> to vector<8x32xbf16>
    %c0_2 = arith.constant 0 : index
    %c0_3 = arith.constant 0 : index
    %3 = vector.load %arg4[%c0_2, %c0_3] : memref<32x192xbf16, #tpu.memory_space<vmem>>, vector<32x192xbf16>
    %cst = arith.constant dense<0.000000e+00> : vector<8x192xf32>
    %4 = tpu.matmul %2, %3, %cst {dimension_numbers = #tpu.dot_dimension_numbers<[1], [0], [0], [1], [0, 0, 1, 1], [], []>} : vector<8x32xbf16>, vector<32x192xbf16>, vector<8x192xf32> -> vector<8x192xf32>
    %c0_4 = arith.constant 0 : index
    %c0_5 = arith.constant 0 : index
    %5 = vector.load %arg5[%c0_4, %c0_5] : memref<1x192xf32, #tpu.memory_space<vmem>>, vector<1x192xf32>
    %6 = vector.broadcast %5 : vector<1x192xf32> to vector<8x192xf32>
    %7 = arith.addf %4, %6 : vector<8x192xf32>
    %8 = arith.truncf %7 : vector<8x192xf32> to vector<8x192xbf16>
    %9 = vector.extract_strided_slice %8 {offsets = [0, 0], sizes = [8, 24], strides = [1, 1]} : vector<8x192xbf16> to vector<8x24xbf16>
    %10 = vector.extract_strided_slice %8 {offsets = [0, 24], sizes = [8, 24], strides = [1, 1]} : vector<8x192xbf16> to vector<8x24xbf16>
    %11 = vector.extract_strided_slice %8 {offsets = [0, 48], sizes = [8, 24], strides = [1, 1]} : vector<8x192xbf16> to vector<8x24xbf16>
    %12 = vector.extract_strided_slice %8 {offsets = [0, 72], sizes = [8, 24], strides = [1, 1]} : vector<8x192xbf16> to vector<8x24xbf16>
    %13 = vector.extract_strided_slice %8 {offsets = [0, 96], sizes = [8, 24], strides = [1, 1]} : vector<8x192xbf16> to vector<8x24xbf16>
    %14 = vector.extract_strided_slice %8 {offsets = [0, 120], sizes = [8, 24], strides = [1, 1]} : vector<8x192xbf16> to vector<8x24xbf16>
    %15 = vector.extract_strided_slice %8 {offsets = [0, 144], sizes = [8, 24], strides = [1, 1]} : vector<8x192xbf16> to vector<8x24xbf16>
    %16 = vector.extract_strided_slice %8 {offsets = [0, 168], sizes = [8, 24], strides = [1, 1]} : vector<8x192xbf16> to vector<8x24xbf16>
    %17 = vector.shape_cast %9 : vector<8x24xbf16> to vector<1x8x24xbf16>
    %18 = vector.shape_cast %10 : vector<8x24xbf16> to vector<1x8x24xbf16>
    %19 = vector.shape_cast %11 : vector<8x24xbf16> to vector<1x8x24xbf16>
    %20 = vector.shape_cast %12 : vector<8x24xbf16> to vector<1x8x24xbf16>
    %21 = vector.shape_cast %13 : vector<8x24xbf16> to vector<1x8x24xbf16>
    %22 = vector.shape_cast %14 : vector<8x24xbf16> to vector<1x8x24xbf16>
    %23 = vector.shape_cast %15 : vector<8x24xbf16> to vector<1x8x24xbf16>
    %24 = vector.shape_cast %16 : vector<8x24xbf16> to vector<1x8x24xbf16>
    %25 = tpu.concatenate %17, %18, %19, %20, %21, %22, %23, %24 in 0 : vector<1x8x24xbf16>, vector<1x8x24xbf16>, vector<1x8x24xbf16>, vector<1x8x24xbf16>, vector<1x8x24xbf16>, vector<1x8x24xbf16>, vector<1x8x24xbf16>, vector<1x8x24xbf16> -> vector<8x8x24xbf16>
    %26 = vector.extract_strided_slice %25 {offsets = [0, 0, 0], sizes = [8, 8, 8], strides = [1, 1, 1]} : vector<8x8x24xbf16> to vector<8x8x8xbf16>
    %27 = vector.extract_strided_slice %25 {offsets = [0, 0, 8], sizes = [8, 8, 8], strides = [1, 1, 1]} : vector<8x8x24xbf16> to vector<8x8x8xbf16>
    %28 = vector.extract_strided_slice %25 {offsets = [0, 0, 16], sizes = [8, 8, 8], strides = [1, 1, 1]} : vector<8x8x24xbf16> to vector<8x8x8xbf16>
    "tpu.trace_start"() <{level = 10 : i32, message = "gqd,gkd->gqk"}> : () -> ()
    %cst_6 = arith.constant dense<0.000000e+00> : vector<8x8x8xf32>
    %29 = tpu.matmul %26, %27, %cst_6 {dimension_numbers = #tpu.dot_dimension_numbers<[2], [2], [1], [1], [0, 0, 0, 1, 1, 1], [0], [0]>} : vector<8x8x8xbf16>, vector<8x8x8xbf16>, vector<8x8x8xf32> -> vector<8x8x8xf32>
    "tpu.trace_stop"() : () -> ()
    %c0_7 = arith.constant 0 : index
    %c0_8 = arith.constant 0 : index
    %c0_9 = arith.constant 0 : index
    %c0_10 = arith.constant 0 : index
    %30 = vector.load %arg3[%c0_7, %c0_8, %c0_9, %c0_10] : memref<1x4x8x8xbf16, #tpu.memory_space<vmem>>, vector<1x4x8x8xbf16>
    %31 = vector.shape_cast %30 : vector<1x4x8x8xbf16> to vector<4x8x8xbf16>
    %32 = arith.extf %31 : vector<4x8x8xbf16> to vector<4x8x8xf32>
    %c0_11 = arith.constant 0 : index
    %c0_12 = arith.constant 0 : index
    %c0_13 = arith.constant 0 : index
    %c0_14 = arith.constant 0 : index
    %33 = vector.load %arg2[%c0_11, %c0_12, %c0_13, %c0_14] : memref<1x2x8x8xbf16, #tpu.memory_space<vmem>>, vector<1x2x8x8xbf16>
    %34 = vector.shape_cast %33 : vector<1x2x8x8xbf16> to vector<2x8x8xbf16>
    %35 = arith.extf %34 : vector<2x8x8xbf16> to vector<2x8x8xf32>
    %36 = vector.shape_cast %29 : vector<8x8x8xf32> to vector<2x4x8x8xf32>
    %37 = vector.shape_cast %32 : vector<4x8x8xf32> to vector<1x4x8x8xf32>
    %38 = vector.broadcast %37 : vector<1x4x8x8xf32> to vector<2x4x8x8xf32>
    %39 = arith.mulf %36, %38 : vector<2x4x8x8xf32>
    %40 = vector.shape_cast %35 : vector<2x8x8xf32> to vector<2x1x8x8xf32>
    %41 = vector.broadcast %40 : vector<2x1x8x8xf32> to vector<2x4x8x8xf32>
    %42 = arith.addf %39, %41 : vector<2x4x8x8xf32>
    %43 = vector.shape_cast %42 : vector<2x4x8x8xf32> to vector<8x8x8xf32>
    %cst_15 = arith.constant dense<0xFF800000> : vector<8x8xf32>
    %44 = vector.multi_reduction <maximumf>, %43, %cst_15 [2] : vector<8x8x8xf32> to vector<8x8xf32>
    %45 = vector.shape_cast %44 : vector<8x8xf32> to vector<8x8x1xf32>
    %46 = vector.broadcast %45 : vector<8x8x1xf32> to vector<8x8x8xf32>
    %47 = arith.subf %43, %46 : vector<8x8x8xf32>
    %48 = math.exp %47 : vector<8x8x8xf32>
    %cst_16 = arith.constant dense<0.000000e+00> : vector<8x8xf32>
    %49 = vector.multi_reduction <add>, %48, %cst_16 [2] : vector<8x8x8xf32> to vector<8x8xf32>
    %50 = vector.shape_cast %49 : vector<8x8xf32> to vector<8x8x1xf32>
    %51 = tpu.reciprocal %50 : vector<8x8x1xf32> -> vector<8x8x1xf32>
    %52 = vector.broadcast %51 : vector<8x8x1xf32> to vector<8x8x8xf32>
    %53 = arith.mulf %48, %52 : vector<8x8x8xf32>
    %54 = arith.truncf %53 : vector<8x8x8xf32> to vector<8x8x8xbf16>
    "tpu.trace_start"() <{level = 10 : i32, message = "gqk,gkd->gqd"}> : () -> ()
    %cst_17 = arith.constant dense<0.000000e+00> : vector<8x8x8xf32>
    %55 = tpu.matmul %54, %28, %cst_17 {dimension_numbers = #tpu.dot_dimension_numbers<[2], [1], [1], [2], [0, 0, 0, 1, 1, 2], [0], [0]>} : vector<8x8x8xbf16>, vector<8x8x8xbf16>, vector<8x8x8xf32> -> vector<8x8x8xf32>
    "tpu.trace_stop"() : () -> ()
    %56 = vector.extract_strided_slice %55 {offsets = [0, 0, 0], sizes = [1, 8, 8], strides = [1, 1, 1]} : vector<8x8x8xf32> to vector<1x8x8xf32>
    %57 = vector.shape_cast %56 : vector<1x8x8xf32> to vector<8x8xf32>
    %58 = vector.extract_strided_slice %55 {offsets = [1, 0, 0], sizes = [1, 8, 8], strides = [1, 1, 1]} : vector<8x8x8xf32> to vector<1x8x8xf32>
    %59 = vector.shape_cast %58 : vector<1x8x8xf32> to vector<8x8xf32>
    %60 = vector.extract_strided_slice %55 {offsets = [2, 0, 0], sizes = [1, 8, 8], strides = [1, 1, 1]} : vector<8x8x8xf32> to vector<1x8x8xf32>
    %61 = vector.shape_cast %60 : vector<1x8x8xf32> to vector<8x8xf32>
    %62 = vector.extract_strided_slice %55 {offsets = [3, 0, 0], sizes = [1, 8, 8], strides = [1, 1, 1]} : vector<8x8x8xf32> to vector<1x8x8xf32>
    %63 = vector.shape_cast %62 : vector<1x8x8xf32> to vector<8x8xf32>
    %64 = vector.extract_strided_slice %55 {offsets = [4, 0, 0], sizes = [1, 8, 8], strides = [1, 1, 1]} : vector<8x8x8xf32> to vector<1x8x8xf32>
    %65 = vector.shape_cast %64 : vector<1x8x8xf32> to vector<8x8xf32>
    %66 = vector.extract_strided_slice %55 {offsets = [5, 0, 0], sizes = [1, 8, 8], strides = [1, 1, 1]} : vector<8x8x8xf32> to vector<1x8x8xf32>
    %67 = vector.shape_cast %66 : vector<1x8x8xf32> to vector<8x8xf32>
    %68 = vector.extract_strided_slice %55 {offsets = [6, 0, 0], sizes = [1, 8, 8], strides = [1, 1, 1]} : vector<8x8x8xf32> to vector<1x8x8xf32>
    %69 = vector.shape_cast %68 : vector<1x8x8xf32> to vector<8x8xf32>
    %70 = vector.extract_strided_slice %55 {offsets = [7, 0, 0], sizes = [1, 8, 8], strides = [1, 1, 1]} : vector<8x8x8xf32> to vector<1x8x8xf32>
    %71 = vector.shape_cast %70 : vector<1x8x8xf32> to vector<8x8xf32>
    %72 = tpu.concatenate %57, %59, %61, %63, %65, %67, %69, %71 in 1 : vector<8x8xf32>, vector<8x8xf32>, vector<8x8xf32>, vector<8x8xf32>, vector<8x8xf32>, vector<8x8xf32>, vector<8x8xf32>, vector<8x8xf32> -> vector<8x64xf32>
    %73 = arith.truncf %72 : vector<8x64xf32> to vector<8x64xbf16>
    %c0_18 = arith.constant 0 : index
    %c0_19 = arith.constant 0 : index
    %74 = vector.load %arg6[%c0_18, %c0_19] : memref<64x32xbf16, #tpu.memory_space<vmem>>, vector<64x32xbf16>
    %cst_20 = arith.constant dense<0.000000e+00> : vector<8x32xf32>
    %75 = tpu.matmul %73, %74, %cst_20 {dimension_numbers = #tpu.dot_dimension_numbers<[1], [0], [0], [1], [0, 0, 1, 1], [], []>} : vector<8x64xbf16>, vector<64x32xbf16>, vector<8x32xf32> -> vector<8x32xf32>
    %c0_21 = arith.constant 0 : index
    %c0_22 = arith.constant 0 : index
    %76 = vector.load %arg7[%c0_21, %c0_22] : memref<1x32xf32, #tpu.memory_space<vmem>>, vector<1x32xf32>
    %77 = vector.broadcast %76 : vector<1x32xf32> to vector<8x32xf32>
    %78 = arith.addf %75, %77 : vector<8x32xf32>
    %c0_23 = arith.constant 0 : index
    %c0_24 = arith.constant 0 : index
    %c0_25 = arith.constant 0 : index
    %79 = vector.load %arg8[%c0_23, %c0_24, %c0_25] : memref<1x8x32xf32, #tpu.memory_space<vmem>>, vector<1x8x32xf32>
    %80 = vector.shape_cast %79 : vector<1x8x32xf32> to vector<8x32xf32>
    %81 = vector.shape_cast %78 : vector<8x32xf32> to vector<1x8x32xf32>
    tpu.vector_store %arg8[%c0_23, %c0_24, %c0_25], %81 {strides = array<i32>} : memref<1x8x32xf32, #tpu.memory_space<vmem>>, vector<1x8x32xf32>,
    return
  }
  func.func @transform_0(%arg0: i32) -> (i32, i32, i32) {
    %c0_i32 = arith.constant 0 : i32
    %c0_i32_0 = arith.constant 0 : i32
    %c0_i32_1 = arith.constant 0 : i32
    return %arg0, %c0_i32, %c0_i32_0 : i32, i32, i32
  }
  func.func @transform_1(%arg0: i32) -> (i32, i32, i32, i32) {
    %c0_i32 = arith.constant 0 : i32
    %c0_i32_0 = arith.constant 0 : i32
    %c0_i32_1 = arith.constant 0 : i32
    %c0_i32_2 = arith.constant 0 : i32
    return %arg0, %c0_i32, %c0_i32_0, %c0_i32_1 : i32, i32, i32, i32
  }
  func.func @transform_2(%arg0: i32) -> (i32, i32, i32, i32) {
    %c0_i32 = arith.constant 0 : i32
    %c0_i32_0 = arith.constant 0 : i32
    %c0_i32_1 = arith.constant 0 : i32
    %c0_i32_2 = arith.constant 0 : i32
    return %arg0, %c0_i32, %c0_i32_0, %c0_i32_1 : i32, i32, i32, i32
  }
  func.func @transform_3(%arg0: i32) -> (i32, i32) {
    %c0_i32 = arith.constant 0 : i32
    %c0_i32_0 = arith.constant 0 : i32
    %c0_i32_1 = arith.constant 0 : i32
    return %c0_i32, %c0_i32_0 : i32, i32
  }
  func.func @transform_4(%arg0: i32) -> (i32, i32) {
    %c0_i32 = arith.constant 0 : i32
    %c0_i32_0 = arith.constant 0 : i32
    %c0_i32_1 = arith.constant 0 : i32
    return %c0_i32, %c0_i32_0 : i32, i32
  }
  func.func @transform_5(%arg0: i32) -> (i32, i32) {
    %c0_i32 = arith.constant 0 : i32
    %c0_i32_0 = arith.constant 0 : i32
    %c0_i32_1 = arith.constant 0 : i32
    return %c0_i32, %c0_i32_0 : i32, i32
  }
  func.func @transform_6(%arg0: i32) -> (i32, i32) {
    %c0_i32 = arith.constant 0 : i32
    %c0_i32_0 = arith.constant 0 : i32
    %c0_i32_1 = arith.constant 0 : i32
    return %c0_i32, %c0_i32_0 : i32, i32
  }
  func.func @transform_7(%arg0: i32) -> (i32, i32, i32) {
    %c0_i32 = arith.constant 0 : i32
    %c0_i32_0 = arith.constant 0 : i32
    %c0_i32_1 = arith.constant 0 : i32
    return %arg0, %c0_i32, %c0_i32_0 : i32, i32, i32
  }
}

</mosaic_0001>

<bundles_post_ra>
// kernel: tpu_custom_call.1
= control target key start
LH: loop header
LB: loop body
LE: loop exit
PB: predicated region body
PF: predicated region fallthrough
CT: control target
= control target key end

     0   :  { %s1972_s0 = inlined_call_operand.vmem [shape: f32[2,8,32], index: 0, kind: input, shape index: {}]   ;;  %s1973_s1 = inlined_call_operand.hbm [shape: bf16[2,2,8,8], index: 1, kind: input, shape index: {}]   ;;  %s1974_s2 = inlined_call_operand.vmem [shape: bf16[2,4,8,8], index: 2, kind: input, shape index: {}]   ;;  %s1975_s3 = inlined_call_operand.hbm [shape: bf16[32,192], index: 3, kind: input, shape index: {}]   ;;  %s1976_s4 = inlined_call_operand.vmem [shape: f32[1,192], index: 4, kind: input, shape index: {}]   ;;  %s1977_s5 = inlined_call_operand.vmem [shape: bf16[64,32], index: 5, kind: input, shape index: {}]   ;;  %s1978_s6 = inlined_call_operand.vmem [shape: f32[1,32], index: 6, kind: input, shape index: {}]   ;;  %s1979_s7 = inlined_call_operand.hbm [shape: f32[2,8,32], index: 7, kind: output, shape index: {}]  }
   0x1   :  { %1980 = sst [smem:[#allocation11_spill]] %s1975_s3 }
   0x2   :  { %12 = vsyncpa [#allocation3], 0 }
   0x3   :  { %14 = vsyncpa [#allocation3 + $0x1], 0 }
   0x4   :  { %15 = vsyncpa [#allocation6], 0 }
   0x5   :  { %16 = vsyncpa [#allocation4], 0 }
   0x6   :  { %18 = vsyncpa [#allocation4 + $0x1], 0  ;;  %s1621_s24 = smov 0   ;;  %s1623_s25 = smov 0  }
   0x7   :  { %s1625_s26 = smov 0   ;;  %s1627_s27 = smov 0  }
   0x8 LB: > { %s1642_s28 = sadd.s32 4294967295, %s1562_s27   ;;  %s1234_s29 = sadd.s32 4294967294, %s1562_s27   ;;  %s1562_s27 = sphi %s1627_s27, %s1995_s27   ;;  %s1558_s26 = sphi %s1625_s26, %s1994_s26   ;;  %s1554_s25 = sphi %s1623_s25, %s1993_s25   ;;  %s1550_s24 = sphi %s1621_s24, %s1992_s24  }
   0x9   : > { %p70_p0 = scmp.ne.s32.totalorder %s1554_s25, %s1550_s24  ;;  %p71_p1 = scmp.eq.s32.totalorder %s1642_s28, 0 }
   0xa   : > { %p204_p2 = scmp.eq.s32.totalorder %s1642_s28, 1  ;;  %p210_p3 = scmp.eq.s32.totalorder %s1234_s29, 1 }
   0xb   : > { %p1651_p4 = por %p71_p1, %p70_p0  ;;  %p1235_p5 = scmp.ge.s32.totalorder %s1562_s27, 1 }
   0xc   : > { %p1656_p6 = por %p210_p3, %p70_p0  ;;  %p217_p7 = scmp.lt.s32.totalorder %s1562_s27, 3 }
   0xd   : > { %s1983_s3 = sld [smem:[#allocation11_spill]]  ;;  %s1564_s13 = smov [#allocation5]  }
   0xe   : > { %p1664_p8 = pnand %p1235_p5, %p217_p7  ;;  %s230_s14 = sshll.u32 %s1564_s13, 4  ;;  %s231_s14 = int_to_ptr.vmem [resolvable:$true] %s230_s14 }
   0xf   : > { %s1674_s15 = sadd.s32 1, %s1562_s27   ;;  %s1565_s16 = smov 128  }
  0x10   : > { %p1334_p9 = pneg %p1664_p8  ;;  %s1566_s17 = smov 8  }
  0x11   : > { %s54_s18 = ssub.s32 %s1562_s27, %s1674_s15  ;;  %s57_s19 = sadd.s32 1, %s1558_s26 }
  0x12   : > { %p1335_p10 = pnand %p1334_p9, %p71_p1  ;;  %p55_p12 = scmp.eq.s32.totalorder %s54_s18, 0 }
  0x13   : > { %s228_s11 = sshll.u32 %s1983_s3, 4  ;;  %p64_p13 = scmp.ne.s32.totalorder %s1558_s26, %s1554_s25  ;;  %s229_s11 = int_to_ptr.hbm [resolvable:$true] %s228_s11 }
  0x14   : > { %1337 = dma.hbm_to_vmem [thread:$0]  (!%p1335_p10), %s229_s11, 512, %s231_s14, [#allocation6], %s1565_s16, %s1565_s16, %s1566_s17  }
  0x15   : > { %p65_p0 = scmp.eq.s32.totalorder %s1562_s27, 0  ;;  %p1347_p3 = scmp.lt.s32.totalorder %s1562_s27, 2 }
  0x16   : > { %s1684_s20 = scalar_select %p55_p12, %s1558_s26, %s57_s19  }
  0x17   : > { %p66_p5 = por %p65_p0, %p64_p13  ;;  %p1688_p7 = por %p204_p2, %p64_p13 }
  0x18   : > { %s260_s22 = sand.u32 1, %s1558_s26   ;;  %s1303_s23 = sshll.u32 %s1562_s27, 3 }
  0x19   : > { %s1238_s29 = sshll.u32 %s260_s22, 3  ;;  %s269_s11 = scalar_lea.hbm %s1973_s1, %s1303_s23 }
  0x1a   : > { %s270_s13 = sshll.u32 %s269_s11, 4  ;;  %s264_s14 = scalar_lea.vmem [#allocation2], %s1238_s29  ;;  %s271_s13 = int_to_ptr.hbm [resolvable:$true] %s270_s13 }
  0x1b   : > { %s272_s16 = sshll.u32 %s264_s14, 4  ;;  %p1699_p9 = pnand %p1347_p3, %p66_p5  ;;  %s273_s16 = int_to_ptr.vmem [resolvable:$true] %s272_s16 }
  0x1c   : > { %s261_s18 = scalar_lea.sflag [#allocation3], %s260_s22  ;;  %s1462_s19 = sshra.s32 %s271_s13, 4  ;;  %s1463_s19 = int_to_ptr.hbm [resolvable:$true] %s1462_s19 }
  0x1d   : > { %s1464_s3 = scalar_lea.hbm %s1463_s19, 8  ;;  %p1466_p10 = pneg %p1699_p9 }
  0x1e   : > { %p1465_p2 = scmp.ne.s32.totalorder %s1463_s19, %s1464_s3  ;;  %s1469_s9 = scalar_lea.hbm %s1973_s1, 16 }
  0x1f   : > { %p1470_p0 = scmp.lt.s32.totalorder %s1463_s19, %s1973_s1  ;;  %p1471_p3 = scmp.lt.s32.totalorder %s1469_s9, %s1464_s3 }
  0x20   : > { %p1467_p12 = pnand %p1466_p10, %p1465_p2 }
  0x21   : > { %p1472_p5 = por %p1471_p3, %p1470_p0 }
  0x22   : > { %p1468_p13 = pneg %p1467_p12 }
  0x24   : > { %p1473_p11 = pnand %p1472_p5, %p1468_p13 }
  0x26   : > { %1476 = shalt.err (!%p1473_p11)
}
  0x27   : > { %s1567_s22 = smov 64   ;;  %s1568_s14 = smov 4  }
  0x28   : > { %1341 = dma.hbm_to_vmem [thread:$0]  (!%p1699_p9), %s271_s13, 128, %s273_s16, %s261_s18, %s1567_s22, %s1567_s22, %s1568_s14  }
  0x29   : > { %292 = sbr.rel (%p1664_p8) target bundleno = 1272 (0x4f8), region = 48  ;;  %s1716_s23 = sand.u32 (!%p1664_p8), 1, %s1554_s25  }
  0x2a   : > { %s1242_s19 = sshll.u32 (!%p1664_p8), %s1716_s23, 3  ;;  %s295_s3 = scalar_lea.sflag (!%p1664_p8), [#allocation3], %s1716_s23 }
  0x2b   : > { %s1722_s29 = scalar_lea.vmem (!%p1664_p8), [#allocation2], %s1242_s19 }
  0x2e   : > { %1537 = dma.done.wait (%p1651_p4), %s295_s3, 128  }
  0x2f   : > { %1539 = vsyncadd (%p1651_p4), %s295_s3, 4294967168 }
  0x30   : > { %1541 = dma.done.wait (%p71_p1), [#allocation6], 512  }
  0x31   : > { %1543 = vsyncadd (%p71_p1), [#allocation6], 4294966784  ;;  %p344_p8 = scmp.lt.s32.totalorder %s1642_s28, 1  ;;  %v1258_v0 = vld [vmem:[#allocation5 + $0x10] sm:$0xf]  ;;  %vm386_vm0 = vcmask 261120  }
  0x32   : > { %v1308_v1 = vld [vmem:[#allocation5 + $0x14] sm:$0xf0]  ;;  %v1307_v2 = vld [vmem:[#allocation5 + $0x14] sm:$0xf]  ;;  %v1260_v4 = vld [vmem:[#allocation5 + $0x18] sm:$0xf0] }
  0x33   : > { %s1734_s12 = scalar_select %p344_p8, %s1642_s28, 1  ;;  %v1259_v3 = vor.u32 %v1308_v1, %v1258_v0  ;;  %v1250_v5 = vld [vmem:[#allocation5] sm:$0xf]  ;;  %v1306_v6 = vld [vmem:[#allocation5 + $0x4] sm:$0xf0]  ;;  %v1263_v7 = vor.u32 %v1307_v2, %v1260_v4  ;;  %vm435_vm1 = vcmask 64512  }
  0x34   : > { %v1305_v8 = vld [vmem:[#allocation5 + $0x4] sm:$0xf]  ;;  %v1252_v9 = vld [vmem:[#allocation5 + $0x8] sm:$0xf0]  ;;  %v1251_v10 = vor.u32 %v1306_v6, %v1250_v5  ;;  %v360_v14 = vld [vmem:[%s1976_s4] sm:$0x3] }
  0x35   : > { %s1245_s13 = sshll.u32 %s1734_s12, 3  ;;  %396 = vmatpush.bf16.msra.mxu0 %v1259_v3  ;;  %409 = vmatpush.bf16.msra.mxu1 %v1263_v7  ;;  %v1255_v12 = vor.u32 %v1305_v8, %v1252_v9  ;;  %v362_v15 = vperm.slane %v360_v14, 0  ;;  %v363_v16 = vperm.slane %v360_v14, 1  ;;  %s1569_s10 = smov 32   ;;  %v1322_v4 = vld [vmem:[%s1722_s29] sm:$0xff]   ;;  %vm855_vm2 = vcmask 1043456  }
  0x36   : > { %s347_s30 = scalar_lea.vmem %s1972_s0, %s1245_s13  ;;  %s1570_s11 = smov 8   ;;  %v1323_v6 = vunpack.c.l.bf16 %v1322_v4 }
  0x37   : > { %v354_v11 = vld [vmem:[%s347_s30] sm:$0xff]  ;;  %s1571_s22 = smov 104   ;;  %s1572_s14 = smov 112  }
  0x38   : > { %v355_v13 = vpack.c.bf16 %v354_v11, %v354_v11  ;;  %s1573_s3 = smov 56   ;;  %s1574_s13 = smov 80  }
  0x39   : > { %397 = vmatpush.bf16.msra.mxu0 %v1251_v10  ;;  %410 = vmatpush.bf16.msra.mxu1 %v1255_v12  ;;  %s1575_s16 = smov 120   ;;  %s1576_s17 = smov 88  }
  0x3a   : > { %s1304_s30 = sshll.u32 %s1734_s12, 4  ;;  %s1577_s29 = smov 24  }
  0x3b   : > { %s1578_s12 = smov 16  }
  0x3c   : > { %1264 = vmatmul.msk.bf16.vlgmr.msra.gmra.mxu0 %vm386_vm0, %v355_v13  ;;  %1265 = vmatmul.msk.bf16.vlgmr.msra.gmra.mxu1 %vm386_vm0, %v355_v13 }
  0xb9   : > { %v399_v17 = vpop.f32.mrf.mxu0  ;;  %v412_v19 = vpop.f32.mrf.mxu1 }
  0xba   : > { %v400_v18 = vadd.f32 %v399_v17, %v362_v15  ;;  %v413_v20 = vadd.f32 %v412_v19, %v363_v16  ;;  %v1324_v17 = vunpack.c.h.bf16 %v1322_v4 }
  0xbc   : > { %v416_v21 = vpack.c.bf16 %v413_v20, %v400_v18 }
  0xbe   : > { %430 = vrot.lane.b32.xlu2 %v416_v21, %s1569_s10  ;;  %432 = vrot.lane.b32.xlu1 %v416_v21, %s1570_s11  ;;  %v437_v24 = vunpack.c.l.b16 %v416_v21 }
  0xbf   : > { %424 = vrot.lane.b32.xlu0 %v416_v21, %s1571_s22  ;;  %s352_s22 = scalar_lea.vmem %s1974_s2, %s1304_s30 }
  0xc0   : > { %v1749_v25 = vpack.c.b16 %v437_v24, %v437_v24  ;;  %v1314_v3 = vld [vmem:[%s352_s22] sm:$0xff]   ;;  %v1325_v24 = vld [vmem:[%s352_s22 + $0x8] sm:$0xff]   ;;  %s1300_s22 = sshll.u32 %s1642_s28, 3  ;;  %s1115_s28 = scalar_lea.sflag [#allocation4], %s1716_s23 }
  0xc1   : > { %v401_v22 = vpop.f32.mrf.mxu0  ;;  %v414_v23 = vpop.f32.mrf.mxu1  ;;  %v1315_v5 = vunpack.c.l.bf16 %v1314_v3  ;;  %v1316_v12 = vunpack.c.h.bf16 %v1314_v3 }
  0xc6   : > { %418 = vrot.lane.b32.xlu2 %v416_v21, %s1572_s14  ;;  %428 = vrot.lane.b32.xlu1 %v416_v21, %s1573_s3 }
  0xc7   : > { %426 = vrot.lane.b32.xlu0 %v416_v21, %s1574_s13  ;;  %s343_s13 = scalar_lea.vmem [#allocation7], %s1242_s19  ;;  %s1512_s19 = scalar_lea.hbm %s1979_s7, 16 }
  0xce   : > { %439 = vrot.lane.b32.xlu1 %v1749_v25, %s1575_s16 }
  0xcf   : > { %421 = vrot.lane.b32.xlu0 %v416_v21, %s1576_s17 }
 0x118   : > { %v431_v26 = vpop.permute.xlu2 %430 }
 0x119   : > { %v530_v31 = vunpack.c.l.b16 %v431_v26 }
 0x11b   : > { %v1759_v40 = vpack.c.b16 %v530_v31, %v530_v31  ;;  %v1320_v31 = vunpack.c.h.bf16 %v1325_v24 }
 0x120   : > { %v419_v32 = vpop.permute.xlu2 %418 }
 0x121   : > { %v420_v38 = vrot.slane %v419_v32, 4 }
 0x123   : > { %v576_v43 = vunpack.c.l.b16 %v420_v38 }
 0x125   : > { %v1771_v49 = vpack.c.b16 %v576_v43, %v576_v43 }
 0x130   : > { %v433_v27 = vpop.permute.xlu1 %432 }
 0x131   : > { %v425_v28 = vpop.permute.xlu0 %424  ;;  %v434_v34 = vrot.slane %v433_v27, 4 }
 0x132   : > { %v461_v29 = vunpack.c.l.b16 %v425_v28 }
 0x133   : > { %v436_v42 = vsel %vm435_vm1, %v433_v27, %v434_v34 }
 0x134   : > { %v1753_v30 = vpack.c.b16 %v461_v29, %v461_v29  ;;  %v553_v44 = vunpack.c.l.b16 %v436_v42 }
 0x136   : > { %463 = vrot.lane.b32.xlu2 %v1753_v30, %s1575_s16  ;;  %v1773_v50 = vpack.c.b16 %v553_v44, %v553_v44 }
 0x138   : > { %v429_v33 = vpop.permute.xlu1 %428 }
 0x139   : > { %v507_v35 = vunpack.c.l.b16 %v429_v33  ;;  %v427_v36 = vpop.permute.xlu0 %426 }
 0x13a   : > { %v484_v37 = vunpack.c.l.b16 %v427_v36 }
 0x13b   : > { %v1757_v39 = vpack.c.b16 %v507_v35, %v507_v35 }
 0x13c   : > { %v1761_v41 = vpack.c.b16 %v484_v37, %v484_v37 }
 0x13d   : > { %509 = vrot.lane.b32.xlu1 %v1757_v39, %s1575_s16 }
 0x13e   : > { %532 = vrot.lane.b32.xlu2 %v1759_v40, %s1575_s16  ;;  %486 = vrot.lane.b32.xlu0 %v1761_v41, %s1575_s16 }
 0x140   : > { %v440_v45 = vpop.permute.xlu1 %439 }
 0x141   : > { %v422_v46 = vpop.permute.xlu0 %421  ;;  %v446_v47 = vsel %vm435_vm1, %v440_v45, 0 }
 0x142   : > { %v423_v48 = vrot.slane %v422_v46, 4  ;;  %455 = vmatpush.bf16.xpose.msra.mxu2 %v446_v47 }
 0x144   : > { %v599_v51 = vunpack.c.l.b16 %v423_v48 }
 0x145   : > { %578 = vrot.lane.b32.xlu1 %v1771_v49, %s1575_s16 }
 0x146   : > { %v1777_v52 = vpack.c.b16 %v599_v51, %v599_v51  ;;  %555 = vrot.lane.b32.xlu0 %v1773_v50, %s1575_s16 }
 0x148   : > { %601 = vrot.lane.b32.xlu2 %v1777_v52, %s1575_s16  ;;  %s1127_s16 = sshll.u32 %s343_s13, 4  ;;  %s1128_s16 = int_to_ptr.vmem [resolvable:$true] %s1127_s16 }
 0x149   : > { %1266 = vmatmul.msk.bf16.vlgmr.msra.gmra.mxu2 %vm435_vm1, %v416_v21 }
 0x190   : > { %v464_v53 = vpop.permute.xlu2 %463 }
 0x191   : > { %v469_v54 = vsel %vm435_vm1, %v464_v53, 0 }
 0x192   : > { %478 = vmatpush.bf16.xpose.msra.mxu3 %v469_v54 }
 0x198   : > { %v533_v55 = vpop.permute.xlu2 %532 }
 0x199   : > { %1267 = vmatmul.msk.bf16.vlgmr.msra.gmra.mxu3 %vm435_vm1, %v425_v28  ;;  %v538_v56 = vsel %vm435_vm1, %v533_v55, 0 }
 0x19a   : > { %547 = vmatpush.bf16.xpose.msrb.mxu2 %v538_v56 }
 0x1a1   : > { %1270 = vmatmul.msk.bf16.vlgmr.msrb.gmra.mxu2 %vm435_vm1, %v431_v26  ;;  %v1319_v26 = vunpack.c.l.bf16 %v1325_v24 }
 0x1a2   : > { %v602_v57 = vpop.permute.xlu2 %601 }
 0x1a3   : > { %v607_v61 = vsel %vm435_vm1, %v602_v57, 0 }
 0x1af   : > { %v510_v58 = vpop.permute.xlu1 %509 }
 0x1b0   : > { %v487_v59 = vpop.permute.xlu0 %486  ;;  %v515_v60 = vsel %vm435_vm1, %v510_v58, 0 }
 0x1b1   : > { %v492_v62 = vsel %vm435_vm1, %v487_v59, 0  ;;  %524 = vmatpush.bf16.xpose.msrb.mxu1 %v515_v60 }
 0x1b2   : > { %501 = vmatpush.bf16.xpose.msrb.mxu0 %v492_v62 }
 0x1b7   : > { %v579_v63 = vpop.permute.xlu1 %578 }
 0x1b8   : > { %v556_v0 = vpop.permute.xlu0 %555  ;;  %v584_v1 = vsel %vm435_vm1, %v579_v63, 0  ;;  %1269 = vmatmul.msk.bf16.vlgmr.msrb.gmra.mxu1 %vm435_vm1, %v429_v33 }
 0x1b9   : > { %616 = vmatpush.bf16.xpose.msra.mxu1 %v607_v61  ;;  %1268 = vmatmul.msk.bf16.vlgmr.msrb.gmra.mxu0 %vm435_vm1, %v427_v36  ;;  %v561_v2 = vsel %vm435_vm1, %v556_v0, 0 }
 0x1ba   : > { %570 = vmatpush.bf16.xpose.msrb.mxu3 %v561_v2  ;;  %593 = vmatpush.bf16.xpose.msra.mxu0 %v584_v1 }
 0x1c1   : > { %1271 = vmatmul.msk.bf16.vlgmr.msrb.gmra.mxu3 %vm435_vm1, %v436_v42 }
 0x1c8   : > { %1273 = vmatmul.msk.bf16.vlgmr.msra.gmra.mxu1 %vm435_vm1, %v423_v48 }
 0x1c9   : > { %1272 = vmatmul.msk.bf16.vlgmr.msra.gmra.mxu0 %vm435_vm1, %v420_v38 }
 0x1cc   : > { %v457_v7 = vpop.f32.mrf.mxu2 }
 0x1cd   : > { %v634_v8 = vmul.f32 %v1315_v5, %v457_v7 }
 0x1cf   : > { %v642_v9 = vadd.f32 %v1323_v6, %v634_v8 }
 0x1d1   : > { %v650_v10 = vsel %vm435_vm1, %v642_v9, -inf }
 0x1d2   : > { %651 = vmax.xlane.f32.xlu0 %v650_v10 }
 0x1d4   : > { %v459_v11 = vpop.f32.mrf.mxu2 }
 0x21c   : > { %v480_v13 = vpop.f32.mrf.mxu3 }
 0x21d   : > { %v635_v14 = vmul.f32 %v1316_v12, %v480_v13 }
 0x21f   : > { %v643_v15 = vadd.f32 %v1323_v6, %v635_v14 }
 0x221   : > { %v653_v16 = vsel %vm435_vm1, %v643_v15, -inf }
 0x222   : > { %654 = vmax.xlane.f32.xlu1 %v653_v16 }
 0x224   : > { %v482_v18 = vpop.f32.mrf.mxu3  ;;  %v549_v19 = vpop.f32.mrf.mxu2 }
 0x225   : > { %v638_v20 = vmul.f32 %v1315_v5, %v549_v19 }
 0x227   : > { %v646_v21 = vadd.f32 %v1324_v17, %v638_v20 }
 0x229   : > { %v662_v22 = vsel %vm435_vm1, %v646_v21, -inf }
 0x22a   : > { %663 = vmax.xlane.f32.xlu0 %v662_v22 }
 0x22c   : > { %v551_v23 = vpop.f32.mrf.mxu2 }
 0x235   : > { %v526_v27 = vpop.f32.mrf.mxu1 }
 0x236   : > { %v503_v28 = vpop.f32.mrf.mxu0  ;;  %v637_v33 = vmul.f32 %v1320_v31, %v526_v27 }
 0x237   : > { %v636_v29 = vmul.f32 %v1319_v26, %v503_v28 }
 0x238   : > { %v645_v37 = vadd.f32 %v1323_v6, %v637_v33 }
 0x239   : > { %v644_v32 = vadd.f32 %v1323_v6, %v636_v29 }
 0x23a   : > { %v659_v38 = vsel %vm435_vm1, %v645_v37, -inf }
 0x23b   : > { %v656_v34 = vsel %vm435_vm1, %v644_v32, -inf }
 0x23c   : > { %657 = vmax.xlane.f32.xlu2 %v656_v34 }
 0x23d   : > { %v528_v35 = vpop.f32.mrf.mxu1 }
 0x23e   : > { %v505_v36 = vpop.f32.mrf.mxu0 }
 0x244   : > { %v572_v42 = vpop.f32.mrf.mxu3  ;;  %660 = vmax.xlane.f32.xlu2 %v659_v38 }
 0x245   : > { %v652_v43 = vpop.xlane.xlu0 %651  ;;  %v618_v44 = vpop.f32.mrf.mxu1  ;;  %v639_v61 = vmul.f32 %v1316_v12, %v572_v42 }
 0x246   : > { %v674_v45 = vsub.f32 %v642_v9, %v652_v43  ;;  %v595_v46 = vpop.f32.mrf.mxu0  ;;  %v641_v47 = vmul.f32 %v1320_v31, %v618_v44 }
 0x247   : > { %v640_v48 = vmul.f32 %v1319_v26, %v595_v46  ;;  %v647_v63 = vadd.f32 %v1324_v17, %v639_v61 }
 0x248   : > { %v682_v51 = vmul.f32 1.442695, %v674_v45  ;;  %v649_v53 = vadd.f32 %v1324_v17, %v641_v47 }
 0x249   : > { %v648_v54 = vadd.f32 %v1324_v17, %v640_v48  ;;  %v665_v0 = vsel %vm435_vm1, %v647_v63, -inf }
 0x24a   : > { %1400 = vpow2.f32 %v682_v51  ;;  %v671_v55 = vsel %vm435_vm1, %v649_v53, -inf }
 0x24b   : > { %672 = vmax.xlane.f32.xlu0 %v671_v55  ;;  %v668_v56 = vsel %vm435_vm1, %v648_v54, -inf }
 0x24c   : > { %v574_v57 = vpop.f32.mrf.mxu3  ;;  %669 = vmax.xlane.f32.xlu2 %v668_v56 }
 0x24d   : > { %v620_v58 = vpop.f32.mrf.mxu1 }
 0x24e   : > { %v597_v59 = vpop.f32.mrf.mxu0 }
 0x250   : > { %v1810_v60 = vpop.eup %1400 }
 0x251   : > { %v698_v62 = vsel %vm435_vm1, %v1810_v60, 0.0 }
 0x252   : > { %699 = vadd.xlane.f32.xlu1 %v698_v62 }
 0x25a   : > { %666 = vmax.xlane.f32.xlu1 %v665_v0 }
 0x264   : > { %872 = vrot.lane.b32.xlu2 %v1753_v30, %s1572_s14 }
 0x273   : > { %850 = vrot.lane.b32.xlu1 %v1749_v25, %s1572_s14 }
 0x295   : > { %v655_v1 = vpop.xlane.xlu1 %654 }
 0x296   : > { %v675_v2 = vsub.f32 %v643_v15, %v655_v1 }
 0x298   : > { %v684_v3 = vmul.f32 1.442695, %v675_v2 }
 0x29a   : > { %1402 = vpow2.f32 %v684_v3 }
 0x29d   : > { %v664_v4 = vpop.xlane.xlu0 %663 }
 0x29e   : > { %v678_v5 = vsub.f32 %v646_v21, %v664_v4 }
 0x2a0   : > { %v1819_v6 = vpop.eup %1402  ;;  %v690_v7 = vmul.f32 1.442695, %v678_v5 }
 0x2a1   : > { %v701_v8 = vsel %vm435_vm1, %v1819_v6, 0.0 }
 0x2a2   : > { %1404 = vpow2.f32 %v690_v7  ;;  %702 = vadd.xlane.f32.xlu2 %v701_v8 }
 0x2a8   : > { %v1823_v9 = vpop.eup %1404 }
 0x2a9   : > { %v710_v30 = vsel %vm435_vm1, %v1823_v9, 0.0 }
 0x2aa   : > { %711 = vadd.xlane.f32.xlu2 %v710_v30 }
 0x2af   : > { %v658_v25 = vpop.xlane.xlu2 %657 }
 0x2b0   : > { %v676_v10 = vsub.f32 %v644_v32, %v658_v25 }
 0x2b2   : > { %v686_v11 = vmul.f32 1.442695, %v676_v10 }
 0x2b4   : > { %1406 = vpow2.f32 %v686_v11 }
 0x2b7   : > { %v661_v12 = vpop.xlane.xlu2 %660 }
 0x2b8   : > { %v677_v13 = vsub.f32 %v645_v37, %v661_v12 }
 0x2ba   : > { %v1827_v14 = vpop.eup %1406  ;;  %v688_v15 = vmul.f32 1.442695, %v677_v13 }
 0x2bb   : > { %v704_v16 = vsel %vm435_vm1, %v1827_v14, 0.0 }
 0x2bc   : > { %1408 = vpow2.f32 %v688_v15  ;;  %705 = vadd.xlane.f32.xlu0 %v704_v16 }
 0x2be   : > { %v673_v17 = vpop.xlane.xlu0 %672 }
 0x2bf   : > { %v670_v18 = vpop.xlane.xlu2 %669  ;;  %v681_v21 = vsub.f32 %v649_v53, %v673_v17 }
 0x2c0   : > { %v680_v19 = vsub.f32 %v648_v54, %v670_v18 }
 0x2c1   : > { %v696_v26 = vmul.f32 1.442695, %v681_v21 }
 0x2c2   : > { %v1831_v20 = vpop.eup %1408  ;;  %v694_v22 = vmul.f32 1.442695, %v680_v19  ;;  %935 = vrot.lane.b32.xlu2 %v1759_v40, %s1572_s14 }
 0x2c3   : > { %v707_v23 = vsel %vm435_vm1, %v1831_v20, 0.0 }
 0x2c4   : > { %1410 = vpow2.f32 %v694_v22  ;;  %708 = vadd.xlane.f32.xlu1 %v707_v23 }
 0x2c5   : > { %v700_v24 = vpop.xlane.xlu1 %699 }
 0x2c6   : > { %1412 = vrcp.f32 %v700_v24  ;;  %v733_v45 = vand.u32 2147483648, %v700_v24  ;;  %vm727_vm4 = vweird.f32 %v700_v24  ;;  %v731_v46 = vand.u32 2147483647, %v700_v24 }
 0x2c7   : > { %v873_v27 = vpop.permute.xlu2 %872  ;;  %1414 = vpow2.f32 %v696_v26 }
 0x2c8   : > { %v878_v28 = vsel %vm855_vm2, %v873_v27, 0  ;;  %v734_v48 = vor.u32 1.1754944e-38, %v733_v45  ;;  %vm732_vm6 = vcmp.eq.f32.partialorder %v731_v46, 8.507059e+37 }
 0x2c9   : > { %887 = vmatpush.bf16.msra.mxu3 %v878_v28 }
 0x2ca   : > { %v1838_v29 = vpop.eup %1410  ;;  %977 = vrot.lane.b32.xlu2 %v1771_v49, %s1572_s14 }
 0x2cb   : > { %v716_v40 = vsel %vm435_vm1, %v1838_v29, 0.0 }
 0x2cc   : > { %v1413_v31 = vpop.eup %1412  ;;  %717 = vadd.xlane.f32.xlu0 %v716_v40 }
 0x2cd   : > { %v667_v32 = vpop.xlane.xlu1 %666  ;;  %v723_v33 = vmul.f32 %v1413_v31, %v700_v24  ;;  %v1844_v35 = vpop.eup %1414  ;;  %vm728_vm3 = vweird.f32 %v1413_v31 }
 0x2ce   : > { %v679_v34 = vsub.f32 %v647_v63, %v667_v32  ;;  %v719_v38 = vsel %vm435_vm1, %v1844_v35, 0.0  ;;  %vm729_vm5 = vmor %vm727_vm4, %vm728_vm3 }
 0x2cf   : > { %v724_v37 = vsub.f32 1.0, %v723_v33 }
 0x2d0   : > { %v692_v36 = vmul.f32 1.442695, %v679_v34 }
 0x2d1   : > { %v725_v42 = vmul.f32 %v1413_v31, %v724_v37 }
 0x2d2   : > { %1416 = vpow2.f32 %v692_v36 }
 0x2d3   : > { %v726_v44 = vadd.f32 %v1413_v31, %v725_v42 }
 0x2d4   : > { %720 = vadd.xlane.f32.xlu0 %v719_v38 }
 0x2d5   : > { %v730_v47 = vsel %vm729_vm5, %v1413_v31, %v726_v44 }
 0x2d6   : > { %v735_v51 = vsel %vm732_vm6, %v734_v48, %v730_v47 }
 0x2d7   : > { %v834_v53 = vmul.f32 %v1810_v60, %v735_v51 }
 0x2d8   : > { %v1848_v43 = vpop.eup %1416 }
 0x2d9   : > { %v713_v49 = vsel %vm435_vm1, %v1848_v43, 0.0  ;;  %v842_v56 = vpack.c.bf16 %v834_v53, %v834_v53 }
 0x2dc   : > { %714 = vadd.xlane.f32.xlu0 %v713_v49 }
 0x2dd   : > { %914 = vrot.lane.b32.xlu1 %v1757_v39, %s1572_s14 }
 0x2e5   : > { %956 = vrot.lane.b32.xlu1 %v1773_v50, %s1572_s14  ;;  %v851_v54 = vpop.permute.xlu1 %850 }
 0x2e6   : > { %v857_v55 = vsel %vm855_vm2, %v851_v54, 0 }
 0x2e7   : > { %866 = vmatpush.bf16.msra.mxu2 %v857_v55 }
 0x2ea   : > { %1274 = vmatmul.msk.bf16.vlgmr.msra.gmra.mxu2 %vm435_vm1, %v842_v56 }
 0x2ed   : > { %998 = vrot.lane.b32.xlu1 %v1777_v52, %s1572_s14 }
 0x2f0   : > { %893 = vrot.lane.b32.xlu0 %v1761_v41, %s1572_s14  ;;  %s1579_s14 = smov 40  }
 0x315   : > { %v703_v39 = vpop.xlane.xlu2 %702 }
 0x316   : > { %1418 = vrcp.f32 %v703_v39  ;;  %v747_v60 = vand.u32 2147483648, %v703_v39  ;;  %v745_v62 = vand.u32 2147483647, %v703_v39  ;;  %vm741_vm8 = vweird.f32 %v703_v39 }
 0x318   : > { %v748_v1 = vor.u32 1.1754944e-38, %v747_v60  ;;  %vm746_vm10 = vcmp.eq.f32.partialorder %v745_v62, 8.507059e+37 }
 0x31c   : > { %v1419_v57 = vpop.eup %1418 }
 0x31d   : > { %v737_v58 = vmul.f32 %v1419_v57, %v703_v39  ;;  %v712_v59 = vpop.xlane.xlu2 %711  ;;  %vm742_vm7 = vweird.f32 %v1419_v57 }
 0x31e   : > { %1420 = vrcp.f32 %v712_v59  ;;  %vm743_vm9 = vmor %vm741_vm8, %vm742_vm7  ;;  %v789_v8 = vand.u32 2147483648, %v712_v59  ;;  %v787_v25 = vand.u32 2147483647, %v712_v59  ;;  %vm783_vm12 = vweird.f32 %v712_v59 }
 0x31f   : > { %v738_v50 = vsub.f32 1.0, %v737_v58 }
 0x320   : > { %v790_v12 = vor.u32 1.1754944e-38, %v789_v8  ;;  %vm788_vm14 = vcmp.eq.f32.partialorder %v787_v25, 8.507059e+37 }
 0x321   : > { %v739_v61 = vmul.f32 %v1419_v57, %v738_v50 }
 0x323   : > { %v740_v63 = vadd.f32 %v1419_v57, %v739_v61 }
 0x324   : > { %v1421_v0 = vpop.eup %1420 }
 0x325   : > { %v744_v52 = vsel %vm743_vm9, %v1419_v57, %v740_v63  ;;  %v779_v2 = vmul.f32 %v1421_v0, %v712_v59  ;;  %v936_v41 = vpop.permute.xlu2 %935  ;;  %vm784_vm11 = vweird.f32 %v1421_v0 }
 0x326   : > { %v749_v3 = vsel %vm746_vm10, %v748_v1, %v744_v52  ;;  %v941_v4 = vsel %vm855_vm2, %v936_v41, 0  ;;  %vm785_vm13 = vmor %vm783_vm12, %vm784_vm11 }
 0x327   : > { %v835_v5 = vmul.f32 %v1819_v6, %v749_v3  ;;  %v780_v7 = vsub.f32 1.0, %v779_v2  ;;  %950 = vmatpush.bf16.msrb.mxu2 %v941_v4 }
 0x329   : > { %v781_v30 = vmul.f32 %v1421_v0, %v780_v7  ;;  %v843_v10 = vpack.c.bf16 %v835_v5, %v835_v5 }
 0x32b   : > { %v782_v11 = vadd.f32 %v1421_v0, %v781_v30  ;;  %1275 = vmatmul.msk.bf16.vlgmr.msra.gmra.mxu3 %vm435_vm1, %v843_v10 }
 0x32d   : > { %v786_v13 = vsel %vm785_vm13, %v1421_v0, %v782_v11 }
 0x32e   : > { %v791_v15 = vsel %vm788_vm14, %v790_v12, %v786_v13 }
 0x32f   : > { %v838_v16 = vmul.f32 %v1823_v9, %v791_v15  ;;  %v1868_v6 = vpop.xlane.xlu0 %705 }
 0x330   : > { %vm755_vm9 = vweird.f32 %v1868_v6  ;;  %v761_v59 = vand.u32 2147483648, %v1868_v6  ;;  %v759_v62 = vand.u32 2147483647, %v1868_v6 }
 0x331   : > { %v846_v17 = vpack.c.bf16 %v838_v16, %v838_v16 }
 0x332   : > { %v762_v5 = vor.u32 1.1754944e-38, %v761_v59  ;;  %vm760_vm14 = vcmp.eq.f32.partialorder %v759_v62, 8.507059e+37 }
 0x333   : > { %1278 = vmatmul.msk.bf16.vlgmr.msrb.gmra.mxu2 %vm435_vm1, %v846_v17 }
 0x337   : > { %v709_v18 = vpop.xlane.xlu1 %708 }
 0x338   : > { %1422 = vrcp.f32 %v709_v18  ;;  %v775_v27 = vand.u32 2147483648, %v709_v18  ;;  %vm769_vm3 = vweird.f32 %v709_v18  ;;  %v773_v9 = vand.u32 2147483647, %v709_v18 }
 0x339   : > { %1424 = vrcp.f32 %v1868_v6 }
 0x33a   : > { %v776_v33 = vor.u32 1.1754944e-38, %v775_v27  ;;  %vm774_vm5 = vcmp.eq.f32.partialorder %v773_v9, 8.507059e+37 }
 0x33e   : > { %v1423_v19 = vpop.eup %1422 }
 0x33f   : > { %v765_v21 = vmul.f32 %v1423_v19, %v709_v18  ;;  %v1870_v22 = vpop.xlane.xlu0 %717  ;;  %vm770_vm15 = vweird.f32 %v1423_v19  ;;  %v1425_v28 = vpop.eup %1424 }
 0x340   : > { %vm771_vm4 = vmor %vm769_vm3, %vm770_vm15  ;;  %v751_v32 = vmul.f32 %v1425_v28, %v1868_v6  ;;  %vm756_vm7 = vweird.f32 %v1425_v28  ;;  %v978_v18 = vpop.permute.xlu2 %977 }
 0x341   : > { %v766_v23 = vsub.f32 1.0, %v765_v21  ;;  %vm1887_vm11 = vmor %vm755_vm9, %vm756_vm7  ;;  %vm1050_vm9 = vcmask 195584  }
 0x342   : > { %v752_v37 = vsub.f32 1.0, %v751_v32 }
 0x343   : > { %v767_v24 = vmul.f32 %v1423_v19, %v766_v23 }
 0x344   : > { %v753_v47 = vmul.f32 %v1425_v28, %v752_v37 }
 0x345   : > { %v768_v26 = vadd.f32 %v1423_v19, %v767_v24 }
 0x346   : > { %v754_v55 = vadd.f32 %v1425_v28, %v753_v47 }
 0x347   : > { %v721_v40 = vpop.xlane.xlu0 %720  ;;  %v772_v31 = vsel %vm771_vm4, %v1423_v19, %v768_v26 }
 0x348   : > { %1426 = vrcp.f32 %v721_v40  ;;  %v777_v34 = vsel %vm774_vm5, %v776_v33, %v772_v31  ;;  %vm825_vm8 = vweird.f32 %v721_v40  ;;  %v829_v39 = vand.u32 2147483647, %v721_v40 }
 0x349   : > { %v837_v38 = vmul.f32 %v1831_v20, %v777_v34  ;;  %v831_v20 = vand.u32 2147483648, %v721_v40  ;;  %v758_v1 = vsel %vm1887_vm11, %v1425_v28, %v754_v55  ;;  %v815_v28 = vand.u32 2147483647, %v1870_v22  ;;  %v1312_v55 = vld [vmem:[%s1977_s5 + $0x18] sm:$0xff] }
 0x34a   : > { %vm830_vm12 = vcmp.eq.f32.partialorder %v829_v39, 8.507059e+37  ;;  %v763_v30 = vsel %vm760_vm14, %v762_v5, %v758_v1  ;;  %1104 = vmatpush.bf16.msra.mxu2 %v1312_v55  ;;  %v1309_v39 = vld [vmem:[%s1977_s5] sm:$0xff]  ;;  %vm1055_vm11 = vcmask 392192  }
 0x34b   : > { %v845_v51 = vpack.c.bf16 %v837_v38, %v837_v38  ;;  %v832_v2 = vor.u32 1.1754944e-38, %v831_v20  ;;  %v836_v17 = vmul.f32 %v1827_v14, %v763_v30  ;;  %v1311_v20 = vld [vmem:[%s1977_s5 + $0x10] sm:$0xff]  ;;  %v1399_v5 = vld [vmem:[%s1978_s6] ss:$0 sm:$0xff] }
 0x34d   : > { %v844_v27 = vpack.c.bf16 %v836_v17, %v836_v17 }
 0x34e   : > { %v1427_v36 = vpop.eup %1426  ;;  %1105 = vmatpush.bf16.msra.mxu2 %v1311_v20 }
 0x34f   : > { %v821_v42 = vmul.f32 %v1427_v36, %v721_v40  ;;  %v715_v49 = vpop.xlane.xlu0 %714  ;;  %v915_v44 = vpop.permute.xlu1 %914  ;;  %vm826_vm6 = vweird.f32 %v1427_v36 }
 0x350   : > { %1428 = vrcp.f32 %v715_v49  ;;  %v920_v46 = vsel %vm855_vm2, %v915_v44, 0  ;;  %vm1882_vm10 = vmor %vm825_vm8, %vm826_vm6  ;;  %v803_v41 = vand.u32 2147483648, %v715_v49  ;;  %v801_v4 = vand.u32 2147483647, %v715_v49 }
 0x351   : > { %1430 = vrcp.f32 %v1870_v22  ;;  %v822_v45 = vsub.f32 1.0, %v821_v42  ;;  %929 = vmatpush.bf16.msrb.mxu1 %v920_v46  ;;  %vm797_vm15 = vweird.f32 %v715_v49  ;;  %vm811_vm6 = vweird.f32 %v1870_v22 }
 0x352   : > { %v804_v25 = vor.u32 1.1754944e-38, %v803_v41  ;;  %vm802_vm4 = vcmp.eq.f32.partialorder %v801_v4, 8.507059e+37  ;;  %vm1048_vm8 = vcmask 130048  }
 0x353   : > { %v823_v48 = vmul.f32 %v1427_v36, %v822_v45 }
 0x354   : > { %1277 = vmatmul.msk.bf16.vlgmr.msrb.gmra.mxu1 %vm435_vm1, %v845_v51 }
 0x355   : > { %v824_v53 = vadd.f32 %v1427_v36, %v823_v48 }
 0x356   : > { %v1429_v54 = vpop.eup %1428 }
 0x357   : > { %v1878_v56 = vpop.eup %1430  ;;  %v793_v57 = vmul.f32 %v1429_v54, %v715_v49  ;;  %v957_v58 = vpop.permute.xlu1 %956  ;;  %v828_v63 = vsel %vm1882_vm10, %v1427_v36, %v824_v53  ;;  %vm798_vm13 = vweird.f32 %v1429_v54  ;;  %vm1053_vm10 = vcmask 326656  }
 0x358   : > { %v962_v60 = vsel %vm855_vm2, %v957_v58, 0  ;;  %v807_v52 = vmul.f32 %v1878_v56, %v1870_v22  ;;  %v833_v7 = vsel %vm830_vm12, %v832_v2, %v828_v63  ;;  %vm799_vm3 = vmor %vm797_vm15, %vm798_vm13  ;;  %vm812_vm5 = vweird.f32 %v1878_v56 }
 0x359   : > { %v794_v0 = vsub.f32 1.0, %v793_v57  ;;  %971 = vmatpush.bf16.msrb.mxu3 %v962_v60  ;;  %v841_v11 = vmul.f32 %v1844_v35, %v833_v7  ;;  %v983_v35 = vsel %vm855_vm2, %v978_v18, 0  ;;  %vm813_vm7 = vmor %vm811_vm6, %vm812_vm5  ;;  %vm1057_vm12 = vcmask 457728  }
 0x35a   : > { %v808_v10 = vsub.f32 1.0, %v807_v52  ;;  %vm1096_vm13 = vcmask 523264  }
 0x35b   : > { %v795_v3 = vmul.f32 %v1429_v54, %v794_v0  ;;  %v849_v24 = vpack.c.bf16 %v841_v11, %v841_v11 }
 0x35c   : > { %v809_v21 = vmul.f32 %v1878_v56, %v808_v10 }
 0x35d   : > { %v796_v8 = vadd.f32 %v1429_v54, %v795_v3 }
 0x35e   : > { %v810_v14 = vadd.f32 %v1878_v56, %v809_v21 }
 0x35f   : > { %v800_v12 = vsel %vm799_vm3, %v1429_v54, %v796_v8  ;;  %v999_v13 = vpop.permute.xlu1 %998 }
 0x360   : > { %v805_v15 = vsel %vm802_vm4, %v804_v25, %v800_v12  ;;  %v1004_v16 = vsel %vm855_vm2, %v999_v13, 0  ;;  %v814_v9 = vsel %vm813_vm7, %v1878_v56, %v810_v14  ;;  %v1310_v56 = vld [vmem:[%s1977_s5 + $0x8] sm:$0xff] }
 0x361   : > { %v839_v6 = vmul.f32 %v1848_v43, %v805_v15  ;;  %1013 = vmatpush.bf16.msra.mxu1 %v1004_v16  ;;  %v817_v43 = vand.u32 2147483648, %v1870_v22  ;;  %1106 = vmatpush.bf16.msra.mxu2 %v1310_v56 }
 0x362   : > { %v894_v19 = vpop.permute.xlu0 %893 }
 0x363   : > { %v899_v23 = vsel %vm855_vm2, %v894_v19, 0  ;;  %v847_v26 = vpack.c.bf16 %v839_v6, %v839_v6  ;;  %v818_v40 = vor.u32 1.1754944e-38, %v817_v43  ;;  %vm816_vm2 = vcmp.eq.f32.partialorder %v815_v28, 8.507059e+37 }
 0x364   : > { %908 = vmatpush.bf16.msrb.mxu0 %v899_v23  ;;  %1281 = vmatmul.msk.bf16.vlgmr.msra.gmra.mxu1 %vm435_vm1, %v849_v24 }
 0x365   : > { %1279 = vmatmul.msk.bf16.vlgmr.msrb.gmra.mxu3 %vm435_vm1, %v847_v26  ;;  %v819_v32 = vsel %vm816_vm2, %v818_v40, %v814_v9  ;;  %1107 = vmatpush.bf16.msra.mxu2 %v1309_v39 }
 0x366   : > { %v840_v33 = vmul.f32 %v1838_v29, %v819_v32 }
 0x367   : > { %1276 = vmatmul.msk.bf16.vlgmr.msrb.gmra.mxu0 %vm435_vm1, %v844_v27 }
 0x368   : > { %992 = vmatpush.bf16.msra.mxu0 %v983_v35  ;;  %v848_v36 = vpack.c.bf16 %v840_v33, %v840_v33 }
 0x36d   : > { %v868_v31 = vpop.f32.mrf.mxu2 }
 0x375   : > { %v870_v34 = vpop.f32.mrf.mxu2 }
 0x377   : > { %1280 = vmatmul.msk.bf16.vlgmr.msra.gmra.mxu0 %vm435_vm1, %v848_v36 }
 0x3ae   : > { %v889_v37 = vpop.f32.mrf.mxu3 }
 0x3af   : > { %1020 = vrot.lane.b32.xlu0 %v889_v37, %s1570_s11  ;;  %s1580_s11 = smov 48  }
 0x3b6   : > { %v891_v38 = vpop.f32.mrf.mxu3  ;;  %v952_v42 = vpop.f32.mrf.mxu2 }
 0x3b7   : > { %1032 = vrot.lane.b32.xlu0 %v952_v42, %s1569_s10 }
 0x3be   : > { %v954_v22 = vpop.f32.mrf.mxu2 }
 0x3d1   : > { %v931_v49 = vpop.f32.mrf.mxu1 }
 0x3d2   : > { %1028 = vrot.lane.b32.xlu1 %v931_v49, %s1577_s29 }
 0x3d9   : > { %v933_v44 = vpop.f32.mrf.mxu1 }
 0x3e1   : > { %v1015_v45 = vpop.f32.mrf.mxu1 }
 0x3e2   : > { %1044 = vrot.lane.b32.xlu0 %v1015_v45, %s1573_s3 }
 0x3e4   : > { %v910_v29 = vpop.f32.mrf.mxu0 }
 0x3e5   : > { %1024 = vrot.lane.b32.xlu2 %v910_v29, %s1578_s12 }
 0x3e8   : > { %v973_v46 = vpop.f32.mrf.mxu3 }
 0x3e9   : > { %v1017_v47 = vpop.f32.mrf.mxu1 }
 0x3ec   : > { %v912_v48 = vpop.f32.mrf.mxu0 }
 0x3ed   : > { %1036 = vrot.lane.b32.xlu2 %v973_v46, %s1579_s14  ;;  %s1125_s14 = scalar_lea.hbm %s1979_s7, %s1300_s22 }
 0x3ee   : > { %s1129_s3 = sshll.u32 %s1125_s14, 4  ;;  %s1130_s3 = int_to_ptr.hbm [resolvable:$true] %s1129_s3 }
 0x3ef   : > { %s1506_s17 = sshra.s32 %s1130_s3, 4  ;;  %s1507_s17 = int_to_ptr.hbm [resolvable:$true] %s1506_s17 }
 0x3f0   : > { %v975_v51 = vpop.f32.mrf.mxu3  ;;  %s1508_s30 = scalar_lea.hbm %s1507_s17, 8  ;;  %p1513_p9 = scmp.lt.s32.totalorder %s1507_s17, %s1979_s7 }
 0x3f1   : > { %p1509_p1 = scmp.ne.s32.totalorder %s1507_s17, %s1508_s30  ;;  %p1514_p2 = scmp.lt.s32.totalorder %s1512_s19, %s1508_s30 }
 0x3f3   : > { %p1510_p4 = pnand %p1509_p1, %p1688_p7  ;;  %p1515_p10 = por %p1514_p2, %p1513_p9 }
 0x3f4   : > { %v994_v53 = vpop.f32.mrf.mxu0 }
 0x3f5   : > { %1040 = vrot.lane.b32.xlu1 %v994_v53, %s1580_s11  ;;  %p1511_p11 = pneg %p1510_p4 }
 0x3f7   : > { %p1516_p12 = pnand %p1515_p10, %p1511_p11 }
 0x3fc   : > { %v996_v54 = vpop.f32.mrf.mxu0 }
 0x421   : > { %v1021_v57 = vpop.permute.xlu0 %1020 }
 0x422   : > { %v1047_v50 = vsel %vm435_vm1, %v868_v31, %v1021_v57 }
 0x429   : > { %v1033_v60 = vpop.permute.xlu0 %1032 }
 0x43f   : > { %v1025_v58 = vpop.permute.xlu2 %1024 }
 0x440   : > { %v1049_v61 = vsel %vm1048_vm8, %v1047_v50, %v1025_v58 }
 0x444   : > { %v1029_v59 = vpop.permute.xlu1 %1028 }
 0x445   : > { %v1051_v62 = vsel %vm1050_vm9, %v1049_v61, %v1029_v59 }
 0x446   : > { %v1052_v0 = vsel %vm386_vm0, %v1051_v62, %v1033_v60 }
 0x447   : > { %v1037_v63 = vpop.permute.xlu2 %1036 }
 0x448   : > { %v1054_v1 = vsel %vm1053_vm10, %v1052_v0, %v1037_v63 }
 0x454   : > { %v1045_v2 = vpop.permute.xlu0 %1044 }
 0x467   : > { %v1041_v52 = vpop.permute.xlu1 %1040 }
 0x468   : > { %v1056_v41 = vsel %vm1055_vm11, %v1054_v1, %v1041_v52 }
 0x469   : > { %v1058_v3 = vsel %vm1057_vm12, %v1056_v41, %v1045_v2 }
 0x46a   : > { %v1059_v4 = vpack.c.bf16 %v1058_v3, %v1058_v3 }
 0x46c   : > { %1298 = vmatmul.msk.bf16.vlgmr.msra.gmra.mxu2 %vm1096_vm13, %v1059_v4 }
 0x4ef   : > { %v1109_v7 = vpop.f32.mrf.mxu2 }
 0x4f0   : > { %v1110_v8 = vadd.f32 %v1399_v5, %v1109_v7 }
 0x4f2   : > { %1113 = vst.msk [vmem:[%s343_s13] sm:$0xff] %vm386_vm0, %v1110_v8 }
 0x4f3   : > { %1519 = shalt.err (!%p1516_p12)
}
 0x4f4   : > { %1332 = dma.vmem_to_hbm [thread:$0]  (%p1688_p7), %s1128_s16, 128, %s1130_s3, %s1115_s28  }
 0x4f7   : > { %v1111_v30 = vpop.f32.mrf.mxu2 }
 0x4f8 PF: > { %s1141_s23 = sand.u32 1, %s1550_s24   ;;  %p1991_p13 = scmp.ge.s32.totalorder %s1562_s27, 2 }
 0x4f9   : > { %s1142_s12 = scalar_lea.sflag [#allocation4], %s1141_s23 }
 0x4fa   : > { %p1343_p0 = pnand %p1991_p13, %p1656_p6 }
 0x4fc   : > { %p1344_p3 = pneg %p1343_p0 }
 0x4fe   : > { %1545 = dma.done.wait (%p1344_p3), %s1142_s12, 128  }
 0x4ff   : > { %1547 = vsyncadd (%p1344_p3), %s1142_s12, 4294967168  ;;  %p21_p5 = scmp.ge.s32.totalorder %s1674_s15, 4   ;;  %s1992_s24 = smov %s1554_s25 }
 0x500   : > { %s1993_s25 = smov %s1558_s26  ;;  %s1994_s26 = smov %s1684_s20 }
 0x501   : > { %s1995_s27 = smov %s1674_s15  ;;  %23 = sbr.rel (!%p21_p5) target bundleno = 8 (0x8), region = 103 }
 0x506   :  { %1148 = vsyncpa [#allocation3], 1 }
 0x507   :  { %1150 = vsyncpa [#allocation3 + $0x1], 1 }
 0x508   :  { %1151 = vsyncpa [#allocation6], 1 }
 0x509   :  { %1152 = vsyncpa [#allocation4], 1 }
 0x50a   :  { %1154 = vsyncpa [#allocation4 + $0x1], 1 }

</bundles_post_ra>
